<compile_context>
chip_gen: v5e
topology: v5e:2x2
jax: 0.10.0
libtpu: 0.0.40
codegen_flags: <defaults>
</compile_context>

<pallas_src>
import functools

import jax
import jax.numpy as jnp
from jax.experimental import pallas as pl
from jax.experimental.pallas import tpu as pltpu


def _fused_encdec_kernel(x_ref, w1_ref, b1_ref, w2_ref, b2_ref,
                         w3_ref, b3_ref, w4_ref, b4_ref, alpha_ref,
                         o_ref, *, B, L, K0, K1):
    f32 = jnp.float32

    def even_odd_compact(Lf):
        # (Lf, Lf//2) selection matrices: E picks even lanes, O picks odd lanes.
        r = jax.lax.broadcasted_iota(jnp.int32, (Lf, Lf // 2), 0)
        c = jax.lax.broadcasted_iota(jnp.int32, (Lf, Lf // 2), 1)
        return (r == 2 * c).astype(f32), (r == 2 * c + 1).astype(f32)

    def even_odd_expand(Lp):
        # (Lp, 2*Lp) scatter matrices: E writes to even lanes, O to odd lanes.
        r = jax.lax.broadcasted_iota(jnp.int32, (Lp, 2 * Lp), 0)
        c = jax.lax.broadcasted_iota(jnp.int32, (Lp, 2 * Lp), 1)
        return (c == 2 * r).astype(f32), (c == 2 * r + 1).astype(f32)

    def conv1d(xf, w_ref, b_ref, K, Lc, act, alpha=None):
        # xf:    (C_in, B*Lc)  batch-folded activations (lane index = b*Lc + l)
        # w_ref: (C_out, K*C_in) im2col-flattened weights (row index = k*C_in + ci)
        # b_ref: (C_out, 1)
        # Per-batch zero padding so taps never cross batch boundaries; one MXU
        # matmul for the whole conv over the whole batch.
        C_in = xf.shape[0]
        p = (K - 1) // 2
        zpad = jnp.zeros((C_in, p), f32)
        slabs = []
        for b in range(B):  # B small & static -> unrolled
            xb = xf[:, b * Lc:(b + 1) * Lc]
            xpb = jnp.concatenate([zpad, xb, zpad], axis=1)        # (C_in, Lc+2p)
            taps = [xpb[:, k:k + Lc] for k in range(K)]
            slabs.append(jnp.concatenate(taps, axis=0))            # (K*C_in, Lc)
        slab = jnp.concatenate(slabs, axis=1)                      # (K*C_in, B*Lc)
        y = jnp.dot(w_ref[...], slab, preferred_element_type=f32) + b_ref[...]
        if act == "relu":
            y = jnp.maximum(y, 0.0)
        else:  # prelu
            y = jnp.maximum(y, 0.0) + alpha * jnp.minimum(y, 0.0)
        return y

    def maxpool2(xf):
        # xf: (C, Lf) -> (values (C, Lf//2), mask (C, Lf//2));
        # mask==1.0 -> the even (earlier) element of the pair was the max.
        Lf = xf.shape[1]
        E, O = even_odd_compact(Lf)
        xe = jnp.dot(xf, E, preferred_element_type=f32)
        xo = jnp.dot(xf, O, preferred_element_type=f32)
        v = jnp.maximum(xe, xo)
        m = (xe >= xo).astype(f32)   # first-max tie-breaking (PyTorch convention)
        return v, m

    def maxunpool2(u, m):
        # u, m: (C, Lp) -> (C, 2*Lp); value placed at even or odd slot per mask.
        Lp = u.shape[1]
        E, O = even_odd_expand(Lp)
        ev = m * u
        od = (1.0 - m) * u
        return (jnp.dot(ev, E, preferred_element_type=f32)
                + jnp.dot(od, O, preferred_element_type=f32))

    # Fold batch into the lane axis: (B, C, L) -> (C, B*L).
    x0 = jnp.concatenate([x_ref[b] for b in range(B)], axis=1).astype(f32)

    # encoder
    a1 = conv1d(x0, w1_ref, b1_ref, K0, L, "relu")                       # (F0, B*L)
    p1, m1 = maxpool2(a1)                                                # (F0, B*L/2)
    a2 = conv1d(p1, w2_ref, b2_ref, K1, L // 2, "relu")                  # (F1, B*L/2)
    p2, m2 = maxpool2(a2)                                                # (F1, B*L/4)
    # decoder
    u1 = maxunpool2(p2, m2)                                              # (F1, B*L/2)
    d1 = conv1d(u1, w3_ref, b3_ref, K1, L // 2, "prelu", alpha_ref[0])   # (F0, B*L/2)
    u2 = maxunpool2(d1, m1)                                              # (F0, B*L)
    d2 = conv1d(u2, w4_ref, b4_ref, K0, L, "prelu", alpha_ref[1])        # (S, B*L)

    # Un-fold batch back to (B, S, L).
    for b in range(B):
        o_ref[b] = d2[:, b * L:(b + 1) * L].astype(o_ref.dtype)


def _im2col_weights(w):
    # (C_out, C_in, K) -> (C_out, K*C_in), column index = k*C_in + ci
    C_out, C_in, K = w.shape
    return jnp.transpose(w, (0, 2, 1)).reshape(C_out, K * C_in).astype(jnp.float32)


def cnn_encoder_decoder_forward(x, params):
    B, S, L = x.shape
    K0 = params["ec1_w"].shape[2]
    K1 = params["ec2_w"].shape[2]
    assert K0 % 2 == 1 and K1 % 2 == 1, "kernel sizes must be odd (module contract)"
    assert L % 4 == 0, "two MaxPool1d(2) stages require a length divisible by 4"

    w1 = _im2col_weights(params["ec1_w"])
    b1 = params["ec1_b"].reshape(-1, 1).astype(jnp.float32)
    w2 = _im2col_weights(params["ec2_w"])
    b2 = params["ec2_b"].reshape(-1, 1).astype(jnp.float32)
    w3 = _im2col_weights(params["dc1_w"])
    b3 = params["dc1_b"].reshape(-1, 1).astype(jnp.float32)
    w4 = _im2col_weights(params["dc2_w"])
    b4 = params["dc2_b"].reshape(-1, 1).astype(jnp.float32)
    alphas = jnp.stack([params["da1_a"], params["da2_a"]]).astype(jnp.float32)

    kern = functools.partial(_fused_encdec_kernel, B=B, L=L, K0=K0, K1=K1)
    vmem = pl.BlockSpec(memory_space=pltpu.MemorySpace.VMEM)
    smem = pl.BlockSpec(memory_space=pltpu.MemorySpace.SMEM)
    return pl.pallas_call(
        kern,
        out_shape=jax.ShapeDtypeStruct((B, S, L), x.dtype),
        in_specs=[vmem] * 9 + [smem],
        out_specs=vmem,
    )(x, w1, b1, w2, b2, w3, b3, w4, b4, alphas)


def init_params(key, input_size, feature_sizes, kernel_sizes):
    S, _ = input_size
    F0, F1 = feature_sizes
    K0, K1 = kernel_sizes
    ks = jax.random.split(key, 8)

    def w(k, shape):
        return (0.1 * jax.random.normal(k, shape)).astype(jnp.float32)

    return {
        "ec1_w": w(ks[0], (F0, S, K0)),
        "ec1_b": w(ks[1], (F0,)),
        "ec2_w": w(ks[2], (F1, F0, K1)),
        "ec2_b": w(ks[3], (F1,)),
        "dc1_w": w(ks[4], (F0, F1, K1)),
        "dc1_b": w(ks[5], (F0,)),
        "dc2_w": w(ks[6], (S, F0, K0)),
        "dc2_b": w(ks[7], (S,)),
        # nn.PReLU() default: single parameter initialised to 0.25
        "da1_a": jnp.float32(0.25),
        "da2_a": jnp.float32(0.25),
    }


if __name__ == "__main__":
    # module config: input_size=(sensor_number=4, data_length=16),
    # feature_sizes=(8, 6), kernel_sizes=(3, 5)
    input_size = (4, 16)
    feature_sizes = (8, 6)
    kernel_sizes = (3, 5)
    batch = 2

    key = jax.random.PRNGKey(0)
    kx, kp = jax.random.split(key)
    x = jax.random.normal(kx, (batch, input_size[0], input_size[1]), jnp.float32)
    params = init_params(kp, input_size, feature_sizes, kernel_sizes)

    fwd = jax.jit(cnn_encoder_decoder_forward)
    out = fwd(x, params)
    jax.block_until_ready(out)

    assert out.shape == (batch, input_size[0], input_size[1])
    assert out.dtype == jnp.float32
    print("KERNEL_OK")
</pallas_src>

<mosaic_0001>
module attributes {stable_mosaic.version = 11 : i64} {
  func.func @_fused_encdec_kernel(%arg0: memref<2x4x16xf32, #tpu.memory_space<vmem>>, %arg1: memref<8x12xf32, #tpu.memory_space<vmem>>, %arg2: memref<8x1xf32, #tpu.memory_space<vmem>>, %arg3: memref<6x40xf32, #tpu.memory_space<vmem>>, %arg4: memref<6x1xf32, #tpu.memory_space<vmem>>, %arg5: memref<8x30xf32, #tpu.memory_space<vmem>>, %arg6: memref<8x1xf32, #tpu.memory_space<vmem>>, %arg7: memref<4x24xf32, #tpu.memory_space<vmem>>, %arg8: memref<4x1xf32, #tpu.memory_space<vmem>>, %arg9: memref<2xf32, #tpu.memory_space<smem>>, %arg10: memref<2x4x16xf32, #tpu.memory_space<vmem>>) attributes {dimension_semantics = [], scalar_prefetch = 0 : i64, scratch_operands = 0 : i64, tpu.core_type = #tpu.core_type<tc>} {
    %c0 = arith.constant 0 : index
    %c0_0 = arith.constant 0 : index
    %c0_1 = arith.constant 0 : index
    %0 = vector.load %arg0[%c0, %c0_0, %c0_1] : memref<2x4x16xf32, #tpu.memory_space<vmem>>, vector<1x4x16xf32>
    %1 = vector.shape_cast %0 : vector<1x4x16xf32> to vector<4x16xf32>
    %c1 = arith.constant 1 : index
    %c0_2 = arith.constant 0 : index
    %c0_3 = arith.constant 0 : index
    %2 = vector.load %arg0[%c1, %c0_2, %c0_3] : memref<2x4x16xf32, #tpu.memory_space<vmem>>, vector<1x4x16xf32>
    %3 = vector.shape_cast %2 : vector<1x4x16xf32> to vector<4x16xf32>
    %4 = tpu.concatenate %1, %3 in 1 : vector<4x16xf32>, vector<4x16xf32> -> vector<4x32xf32>
    %cst = arith.constant 0.000000e+00 : f32
    %5 = vector.broadcast %cst : f32 to vector<4x1xf32>
    %6 = vector.extract_strided_slice %4 {offsets = [0, 0], sizes = [4, 16], strides = [1, 1]} : vector<4x32xf32> to vector<4x16xf32>
    %7 = tpu.concatenate %5, %6, %5 in 1 : vector<4x1xf32>, vector<4x16xf32>, vector<4x1xf32> -> vector<4x18xf32>
    %8 = vector.extract_strided_slice %7 {offsets = [0, 0], sizes = [4, 16], strides = [1, 1]} : vector<4x18xf32> to vector<4x16xf32>
    %9 = vector.extract_strided_slice %7 {offsets = [0, 1], sizes = [4, 16], strides = [1, 1]} : vector<4x18xf32> to vector<4x16xf32>
    %10 = vector.extract_strided_slice %7 {offsets = [0, 2], sizes = [4, 16], strides = [1, 1]} : vector<4x18xf32> to vector<4x16xf32>
    %11 = tpu.concatenate %8, %9, %10 in 0 : vector<4x16xf32>, vector<4x16xf32>, vector<4x16xf32> -> vector<12x16xf32>
    %12 = vector.extract_strided_slice %4 {offsets = [0, 16], sizes = [4, 16], strides = [1, 1]} : vector<4x32xf32> to vector<4x16xf32>
    %13 = tpu.concatenate %5, %12, %5 in 1 : vector<4x1xf32>, vector<4x16xf32>, vector<4x1xf32> -> vector<4x18xf32>
    %14 = vector.extract_strided_slice %13 {offsets = [0, 0], sizes = [4, 16], strides = [1, 1]} : vector<4x18xf32> to vector<4x16xf32>
    %15 = vector.extract_strided_slice %13 {offsets = [0, 1], sizes = [4, 16], strides = [1, 1]} : vector<4x18xf32> to vector<4x16xf32>
    %16 = vector.extract_strided_slice %13 {offsets = [0, 2], sizes = [4, 16], strides = [1, 1]} : vector<4x18xf32> to vector<4x16xf32>
    %17 = tpu.concatenate %14, %15, %16 in 0 : vector<4x16xf32>, vector<4x16xf32>, vector<4x16xf32> -> vector<12x16xf32>
    %18 = tpu.concatenate %11, %17 in 1 : vector<12x16xf32>, vector<12x16xf32> -> vector<12x32xf32>
    %c0_4 = arith.constant 0 : index
    %c0_5 = arith.constant 0 : index
    %19 = vector.load %arg1[%c0_4, %c0_5] : memref<8x12xf32, #tpu.memory_space<vmem>>, vector<8x12xf32>
    %cst_6 = arith.constant dense<0.000000e+00> : vector<8x32xf32>
    %20 = tpu.matmul %19, %18, %cst_6 {dimension_numbers = #tpu.dot_dimension_numbers<[1], [0], [0], [1], [0, 0, 1, 1], [], []>} : vector<8x12xf32>, vector<12x32xf32>, vector<8x32xf32> -> vector<8x32xf32>
    %c0_7 = arith.constant 0 : index
    %c0_8 = arith.constant 0 : index
    %21 = vector.load %arg2[%c0_7, %c0_8] : memref<8x1xf32, #tpu.memory_space<vmem>>, vector<8x1xf32>
    %22 = vector.broadcast %21 : vector<8x1xf32> to vector<8x32xf32>
    %23 = arith.addf %20, %22 : vector<8x32xf32>
    %cst_9 = arith.constant 0.000000e+00 : f32
    %24 = vector.broadcast %cst_9 : f32 to vector<8x32xf32>
    %25 = arith.maximumf %23, %24 : vector<8x32xf32>
    %26 = tpu.iota {dimensions = array<i32: 0>} : vector<32x16xi32>
    %27 = tpu.iota {dimensions = array<i32: 1>} : vector<32x16xi32>
    %c2_i32 = arith.constant 2 : i32
    %28 = vector.broadcast %c2_i32 : i32 to vector<32x16xi32>
    %29 = arith.muli %28, %27 : vector<32x16xi32>
    %30 = arith.cmpi eq, %26, %29 : vector<32x16xi32>
    %31 = arith.extui %30 : vector<32x16xi1> to vector<32x16xi32>
    %32 = arith.sitofp %31 : vector<32x16xi32> to vector<32x16xf32>
    %c2_i32_10 = arith.constant 2 : i32
    %33 = vector.broadcast %c2_i32_10 : i32 to vector<32x16xi32>
    %34 = arith.muli %33, %27 : vector<32x16xi32>
    %c1_i32 = arith.constant 1 : i32
    %35 = vector.broadcast %c1_i32 : i32 to vector<32x16xi32>
    %36 = arith.addi %34, %35 : vector<32x16xi32>
    %37 = arith.cmpi eq, %26, %36 : vector<32x16xi32>
    %38 = arith.extui %37 : vector<32x16xi1> to vector<32x16xi32>
    %39 = arith.sitofp %38 : vector<32x16xi32> to vector<32x16xf32>
    %cst_11 = arith.constant dense<0.000000e+00> : vector<8x16xf32>
    %40 = tpu.matmul %25, %32, %cst_11 {dimension_numbers = #tpu.dot_dimension_numbers<[1], [0], [0], [1], [0, 0, 1, 1], [], []>} : vector<8x32xf32>, vector<32x16xf32>, vector<8x16xf32> -> vector<8x16xf32>
    %cst_12 = arith.constant dense<0.000000e+00> : vector<8x16xf32>
    %41 = tpu.matmul %25, %39, %cst_12 {dimension_numbers = #tpu.dot_dimension_numbers<[1], [0], [0], [1], [0, 0, 1, 1], [], []>} : vector<8x32xf32>, vector<32x16xf32>, vector<8x16xf32> -> vector<8x16xf32>
    %42 = arith.maximumf %40, %41 : vector<8x16xf32>
    %43 = arith.cmpf oge, %40, %41 : vector<8x16xf32>
    %44 = arith.extui %43 : vector<8x16xi1> to vector<8x16xi32>
    %45 = arith.sitofp %44 : vector<8x16xi32> to vector<8x16xf32>
    %cst_13 = arith.constant 0.000000e+00 : f32
    %46 = vector.broadcast %cst_13 : f32 to vector<8x2xf32>
    %47 = vector.extract_strided_slice %42 {offsets = [0, 0], sizes = [8, 8], strides = [1, 1]} : vector<8x16xf32> to vector<8x8xf32>
    %48 = tpu.concatenate %46, %47, %46 in 1 : vector<8x2xf32>, vector<8x8xf32>, vector<8x2xf32> -> vector<8x12xf32>
    %49 = vector.extract_strided_slice %48 {offsets = [0, 0], sizes = [8, 8], strides = [1, 1]} : vector<8x12xf32> to vector<8x8xf32>
    %50 = vector.extract_strided_slice %48 {offsets = [0, 1], sizes = [8, 8], strides = [1, 1]} : vector<8x12xf32> to vector<8x8xf32>
    %51 = vector.extract_strided_slice %48 {offsets = [0, 2], sizes = [8, 8], strides = [1, 1]} : vector<8x12xf32> to vector<8x8xf32>
    %52 = vector.extract_strided_slice %48 {offsets = [0, 3], sizes = [8, 8], strides = [1, 1]} : vector<8x12xf32> to vector<8x8xf32>
    %53 = vector.extract_strided_slice %48 {offsets = [0, 4], sizes = [8, 8], strides = [1, 1]} : vector<8x12xf32> to vector<8x8xf32>
    %54 = tpu.concatenate %49, %50, %51, %52, %53 in 0 : vector<8x8xf32>, vector<8x8xf32>, vector<8x8xf32>, vector<8x8xf32>, vector<8x8xf32> -> vector<40x8xf32>
    %55 = vector.extract_strided_slice %42 {offsets = [0, 8], sizes = [8, 8], strides = [1, 1]} : vector<8x16xf32> to vector<8x8xf32>
    %56 = tpu.concatenate %46, %55, %46 in 1 : vector<8x2xf32>, vector<8x8xf32>, vector<8x2xf32> -> vector<8x12xf32>
    %57 = vector.extract_strided_slice %56 {offsets = [0, 0], sizes = [8, 8], strides = [1, 1]} : vector<8x12xf32> to vector<8x8xf32>
    %58 = vector.extract_strided_slice %56 {offsets = [0, 1], sizes = [8, 8], strides = [1, 1]} : vector<8x12xf32> to vector<8x8xf32>
    %59 = vector.extract_strided_slice %56 {offsets = [0, 2], sizes = [8, 8], strides = [1, 1]} : vector<8x12xf32> to vector<8x8xf32>
    %60 = vector.extract_strided_slice %56 {offsets = [0, 3], sizes = [8, 8], strides = [1, 1]} : vector<8x12xf32> to vector<8x8xf32>
    %61 = vector.extract_strided_slice %56 {offsets = [0, 4], sizes = [8, 8], strides = [1, 1]} : vector<8x12xf32> to vector<8x8xf32>
    %62 = tpu.concatenate %57, %58, %59, %60, %61 in 0 : vector<8x8xf32>, vector<8x8xf32>, vector<8x8xf32>, vector<8x8xf32>, vector<8x8xf32> -> vector<40x8xf32>
    %63 = tpu.concatenate %54, %62 in 1 : vector<40x8xf32>, vector<40x8xf32> -> vector<40x16xf32>
    %c0_14 = arith.constant 0 : index
    %c0_15 = arith.constant 0 : index
    %64 = vector.load %arg3[%c0_14, %c0_15] : memref<6x40xf32, #tpu.memory_space<vmem>>, vector<6x40xf32>
    %cst_16 = arith.constant dense<0.000000e+00> : vector<6x16xf32>
    %65 = tpu.matmul %64, %63, %cst_16 {dimension_numbers = #tpu.dot_dimension_numbers<[1], [0], [0], [1], [0, 0, 1, 1], [], []>} : vector<6x40xf32>, vector<40x16xf32>, vector<6x16xf32> -> vector<6x16xf32>
    %c0_17 = arith.constant 0 : index
    %c0_18 = arith.constant 0 : index
    %66 = vector.load %arg4[%c0_17, %c0_18] : memref<6x1xf32, #tpu.memory_space<vmem>>, vector<6x1xf32>
    %67 = vector.broadcast %66 : vector<6x1xf32> to vector<6x16xf32>
    %68 = arith.addf %65, %67 : vector<6x16xf32>
    %cst_19 = arith.constant 0.000000e+00 : f32
    %69 = vector.broadcast %cst_19 : f32 to vector<6x16xf32>
    %70 = arith.maximumf %68, %69 : vector<6x16xf32>
    %71 = tpu.iota {dimensions = array<i32: 0>} : vector<16x8xi32>
    %72 = tpu.iota {dimensions = array<i32: 1>} : vector<16x8xi32>
    %c2_i32_20 = arith.constant 2 : i32
    %73 = vector.broadcast %c2_i32_20 : i32 to vector<16x8xi32>
    %74 = arith.muli %73, %72 : vector<16x8xi32>
    %75 = arith.cmpi eq, %71, %74 : vector<16x8xi32>
    %76 = arith.extui %75 : vector<16x8xi1> to vector<16x8xi32>
    %77 = arith.sitofp %76 : vector<16x8xi32> to vector<16x8xf32>
    %c2_i32_21 = arith.constant 2 : i32
    %78 = vector.broadcast %c2_i32_21 : i32 to vector<16x8xi32>
    %79 = arith.muli %78, %72 : vector<16x8xi32>
    %c1_i32_22 = arith.constant 1 : i32
    %80 = vector.broadcast %c1_i32_22 : i32 to vector<16x8xi32>
    %81 = arith.addi %79, %80 : vector<16x8xi32>
    %82 = arith.cmpi eq, %71, %81 : vector<16x8xi32>
    %83 = arith.extui %82 : vector<16x8xi1> to vector<16x8xi32>
    %84 = arith.sitofp %83 : vector<16x8xi32> to vector<16x8xf32>
    %cst_23 = arith.constant dense<0.000000e+00> : vector<6x8xf32>
    %85 = tpu.matmul %70, %77, %cst_23 {dimension_numbers = #tpu.dot_dimension_numbers<[1], [0], [0], [1], [0, 0, 1, 1], [], []>} : vector<6x16xf32>, vector<16x8xf32>, vector<6x8xf32> -> vector<6x8xf32>
    %cst_24 = arith.constant dense<0.000000e+00> : vector<6x8xf32>
    %86 = tpu.matmul %70, %84, %cst_24 {dimension_numbers = #tpu.dot_dimension_numbers<[1], [0], [0], [1], [0, 0, 1, 1], [], []>} : vector<6x16xf32>, vector<16x8xf32>, vector<6x8xf32> -> vector<6x8xf32>
    %87 = arith.maximumf %85, %86 : vector<6x8xf32>
    %88 = arith.cmpf oge, %85, %86 : vector<6x8xf32>
    %89 = arith.extui %88 : vector<6x8xi1> to vector<6x8xi32>
    %90 = arith.sitofp %89 : vector<6x8xi32> to vector<6x8xf32>
    %91 = tpu.iota {dimensions = array<i32: 0>} : vector<8x16xi32>
    %92 = tpu.iota {dimensions = array<i32: 1>} : vector<8x16xi32>
    %c2_i32_25 = arith.constant 2 : i32
    %93 = vector.broadcast %c2_i32_25 : i32 to vector<8x16xi32>
    %94 = arith.muli %93, %91 : vector<8x16xi32>
    %95 = arith.cmpi eq, %92, %94 : vector<8x16xi32>
    %96 = arith.extui %95 : vector<8x16xi1> to vector<8x16xi32>
    %97 = arith.sitofp %96 : vector<8x16xi32> to vector<8x16xf32>
    %c2_i32_26 = arith.constant 2 : i32
    %98 = vector.broadcast %c2_i32_26 : i32 to vector<8x16xi32>
    %99 = arith.muli %98, %91 : vector<8x16xi32>
    %c1_i32_27 = arith.constant 1 : i32
    %100 = vector.broadcast %c1_i32_27 : i32 to vector<8x16xi32>
    %101 = arith.addi %99, %100 : vector<8x16xi32>
    %102 = arith.cmpi eq, %92, %101 : vector<8x16xi32>
    %103 = arith.extui %102 : vector<8x16xi1> to vector<8x16xi32>
    %104 = arith.sitofp %103 : vector<8x16xi32> to vector<8x16xf32>
    %105 = arith.mulf %90, %87 : vector<6x8xf32>
    %cst_28 = arith.constant 1.000000e+00 : f32
    %106 = vector.broadcast %cst_28 : f32 to vector<6x8xf32>
    %107 = arith.subf %106, %90 : vector<6x8xf32>
    %108 = arith.mulf %107, %87 : vector<6x8xf32>
    %cst_29 = arith.constant dense<0.000000e+00> : vector<6x16xf32>
    %109 = tpu.matmul %105, %97, %cst_29 {dimension_numbers = #tpu.dot_dimension_numbers<[1], [0], [0], [1], [0, 0, 1, 1], [], []>} : vector<6x8xf32>, vector<8x16xf32>, vector<6x16xf32> -> vector<6x16xf32>
    %cst_30 = arith.constant dense<0.000000e+00> : vector<6x16xf32>
    %110 = tpu.matmul %108, %104, %cst_30 {dimension_numbers = #tpu.dot_dimension_numbers<[1], [0], [0], [1], [0, 0, 1, 1], [], []>} : vector<6x8xf32>, vector<8x16xf32>, vector<6x16xf32> -> vector<6x16xf32>
    %111 = arith.addf %109, %110 : vector<6x16xf32>
    %c0_31 = arith.constant 0 : index
    %112 = memref.load %arg9[%c0_31] : memref<2xf32, #tpu.memory_space<smem>>
    %cst_32 = arith.constant 0.000000e+00 : f32
    %113 = vector.broadcast %cst_32 : f32 to vector<6x2xf32>
    %114 = vector.extract_strided_slice %111 {offsets = [0, 0], sizes = [6, 8], strides = [1, 1]} : vector<6x16xf32> to vector<6x8xf32>
    %115 = tpu.concatenate %113, %114, %113 in 1 : vector<6x2xf32>, vector<6x8xf32>, vector<6x2xf32> -> vector<6x12xf32>
    %116 = vector.extract_strided_slice %115 {offsets = [0, 0], sizes = [6, 8], strides = [1, 1]} : vector<6x12xf32> to vector<6x8xf32>
    %117 = vector.extract_strided_slice %115 {offsets = [0, 1], sizes = [6, 8], strides = [1, 1]} : vector<6x12xf32> to vector<6x8xf32>
    %118 = vector.extract_strided_slice %115 {offsets = [0, 2], sizes = [6, 8], strides = [1, 1]} : vector<6x12xf32> to vector<6x8xf32>
    %119 = vector.extract_strided_slice %115 {offsets = [0, 3], sizes = [6, 8], strides = [1, 1]} : vector<6x12xf32> to vector<6x8xf32>
    %120 = vector.extract_strided_slice %115 {offsets = [0, 4], sizes = [6, 8], strides = [1, 1]} : vector<6x12xf32> to vector<6x8xf32>
    %121 = tpu.concatenate %116, %117, %118, %119, %120 in 0 : vector<6x8xf32>, vector<6x8xf32>, vector<6x8xf32>, vector<6x8xf32>, vector<6x8xf32> -> vector<30x8xf32>
    %122 = vector.extract_strided_slice %111 {offsets = [0, 8], sizes = [6, 8], strides = [1, 1]} : vector<6x16xf32> to vector<6x8xf32>
    %123 = tpu.concatenate %113, %122, %113 in 1 : vector<6x2xf32>, vector<6x8xf32>, vector<6x2xf32> -> vector<6x12xf32>
    %124 = vector.extract_strided_slice %123 {offsets = [0, 0], sizes = [6, 8], strides = [1, 1]} : vector<6x12xf32> to vector<6x8xf32>
    %125 = vector.extract_strided_slice %123 {offsets = [0, 1], sizes = [6, 8], strides = [1, 1]} : vector<6x12xf32> to vector<6x8xf32>
    %126 = vector.extract_strided_slice %123 {offsets = [0, 2], sizes = [6, 8], strides = [1, 1]} : vector<6x12xf32> to vector<6x8xf32>
    %127 = vector.extract_strided_slice %123 {offsets = [0, 3], sizes = [6, 8], strides = [1, 1]} : vector<6x12xf32> to vector<6x8xf32>
    %128 = vector.extract_strided_slice %123 {offsets = [0, 4], sizes = [6, 8], strides = [1, 1]} : vector<6x12xf32> to vector<6x8xf32>
    %129 = tpu.concatenate %124, %125, %126, %127, %128 in 0 : vector<6x8xf32>, vector<6x8xf32>, vector<6x8xf32>, vector<6x8xf32>, vector<6x8xf32> -> vector<30x8xf32>
    %130 = tpu.concatenate %121, %129 in 1 : vector<30x8xf32>, vector<30x8xf32> -> vector<30x16xf32>
    %c0_33 = arith.constant 0 : index
    %c0_34 = arith.constant 0 : index
    %131 = vector.load %arg5[%c0_33, %c0_34] : memref<8x30xf32, #tpu.memory_space<vmem>>, vector<8x30xf32>
    %cst_35 = arith.constant dense<0.000000e+00> : vector<8x16xf32>
    %132 = tpu.matmul %131, %130, %cst_35 {dimension_numbers = #tpu.dot_dimension_numbers<[1], [0], [0], [1], [0, 0, 1, 1], [], []>} : vector<8x30xf32>, vector<30x16xf32>, vector<8x16xf32> -> vector<8x16xf32>
    %c0_36 = arith.constant 0 : index
    %c0_37 = arith.constant 0 : index
    %133 = vector.load %arg6[%c0_36, %c0_37] : memref<8x1xf32, #tpu.memory_space<vmem>>, vector<8x1xf32>
    %134 = vector.broadcast %133 : vector<8x1xf32> to vector<8x16xf32>
    %135 = arith.addf %132, %134 : vector<8x16xf32>
    %cst_38 = arith.constant 0.000000e+00 : f32
    %136 = vector.broadcast %cst_38 : f32 to vector<8x16xf32>
    %137 = arith.maximumf %135, %136 : vector<8x16xf32>
    %cst_39 = arith.constant 0.000000e+00 : f32
    %138 = vector.broadcast %cst_39 : f32 to vector<8x16xf32>
    %139 = arith.minimumf %135, %138 : vector<8x16xf32>
    %140 = vector.broadcast %112 : f32 to vector<8x16xf32>
    %141 = arith.mulf %140, %139 : vector<8x16xf32>
    %142 = arith.addf %137, %141 : vector<8x16xf32>
    %143 = tpu.iota {dimensions = array<i32: 0>} : vector<16x32xi32>
    %144 = tpu.iota {dimensions = array<i32: 1>} : vector<16x32xi32>
    %c2_i32_40 = arith.constant 2 : i32
    %145 = vector.broadcast %c2_i32_40 : i32 to vector<16x32xi32>
    %146 = arith.muli %145, %143 : vector<16x32xi32>
    %147 = arith.cmpi eq, %144, %146 : vector<16x32xi32>
    %148 = arith.extui %147 : vector<16x32xi1> to vector<16x32xi32>
    %149 = arith.sitofp %148 : vector<16x32xi32> to vector<16x32xf32>
    %c2_i32_41 = arith.constant 2 : i32
    %150 = vector.broadcast %c2_i32_41 : i32 to vector<16x32xi32>
    %151 = arith.muli %150, %143 : vector<16x32xi32>
    %c1_i32_42 = arith.constant 1 : i32
    %152 = vector.broadcast %c1_i32_42 : i32 to vector<16x32xi32>
    %153 = arith.addi %151, %152 : vector<16x32xi32>
    %154 = arith.cmpi eq, %144, %153 : vector<16x32xi32>
    %155 = arith.extui %154 : vector<16x32xi1> to vector<16x32xi32>
    %156 = arith.sitofp %155 : vector<16x32xi32> to vector<16x32xf32>
    %157 = arith.mulf %45, %142 : vector<8x16xf32>
    %cst_43 = arith.constant 1.000000e+00 : f32
    %158 = vector.broadcast %cst_43 : f32 to vector<8x16xf32>
    %159 = arith.subf %158, %45 : vector<8x16xf32>
    %160 = arith.mulf %159, %142 : vector<8x16xf32>
    %cst_44 = arith.constant dense<0.000000e+00> : vector<8x32xf32>
    %161 = tpu.matmul %157, %149, %cst_44 {dimension_numbers = #tpu.dot_dimension_numbers<[1], [0], [0], [1], [0, 0, 1, 1], [], []>} : vector<8x16xf32>, vector<16x32xf32>, vector<8x32xf32> -> vector<8x32xf32>
    %cst_45 = arith.constant dense<0.000000e+00> : vector<8x32xf32>
    %162 = tpu.matmul %160, %156, %cst_45 {dimension_numbers = #tpu.dot_dimension_numbers<[1], [0], [0], [1], [0, 0, 1, 1], [], []>} : vector<8x16xf32>, vector<16x32xf32>, vector<8x32xf32> -> vector<8x32xf32>
    %163 = arith.addf %161, %162 : vector<8x32xf32>
    %c1_46 = arith.constant 1 : index
    %164 = memref.load %arg9[%c1_46] : memref<2xf32, #tpu.memory_space<smem>>
    %cst_47 = arith.constant 0.000000e+00 : f32
    %165 = vector.broadcast %cst_47 : f32 to vector<8x1xf32>
    %166 = vector.extract_strided_slice %163 {offsets = [0, 0], sizes = [8, 16], strides = [1, 1]} : vector<8x32xf32> to vector<8x16xf32>
    %167 = tpu.concatenate %165, %166, %165 in 1 : vector<8x1xf32>, vector<8x16xf32>, vector<8x1xf32> -> vector<8x18xf32>
    %168 = vector.extract_strided_slice %167 {offsets = [0, 0], sizes = [8, 16], strides = [1, 1]} : vector<8x18xf32> to vector<8x16xf32>
    %169 = vector.extract_strided_slice %167 {offsets = [0, 1], sizes = [8, 16], strides = [1, 1]} : vector<8x18xf32> to vector<8x16xf32>
    %170 = vector.extract_strided_slice %167 {offsets = [0, 2], sizes = [8, 16], strides = [1, 1]} : vector<8x18xf32> to vector<8x16xf32>
    %171 = tpu.concatenate %168, %169, %170 in 0 : vector<8x16xf32>, vector<8x16xf32>, vector<8x16xf32> -> vector<24x16xf32>
    %172 = vector.extract_strided_slice %163 {offsets = [0, 16], sizes = [8, 16], strides = [1, 1]} : vector<8x32xf32> to vector<8x16xf32>
    %173 = tpu.concatenate %165, %172, %165 in 1 : vector<8x1xf32>, vector<8x16xf32>, vector<8x1xf32> -> vector<8x18xf32>
    %174 = vector.extract_strided_slice %173 {offsets = [0, 0], sizes = [8, 16], strides = [1, 1]} : vector<8x18xf32> to vector<8x16xf32>
    %175 = vector.extract_strided_slice %173 {offsets = [0, 1], sizes = [8, 16], strides = [1, 1]} : vector<8x18xf32> to vector<8x16xf32>
    %176 = vector.extract_strided_slice %173 {offsets = [0, 2], sizes = [8, 16], strides = [1, 1]} : vector<8x18xf32> to vector<8x16xf32>
    %177 = tpu.concatenate %174, %175, %176 in 0 : vector<8x16xf32>, vector<8x16xf32>, vector<8x16xf32> -> vector<24x16xf32>
    %178 = tpu.concatenate %171, %177 in 1 : vector<24x16xf32>, vector<24x16xf32> -> vector<24x32xf32>
    %c0_48 = arith.constant 0 : index
    %c0_49 = arith.constant 0 : index
    %179 = vector.load %arg7[%c0_48, %c0_49] : memref<4x24xf32, #tpu.memory_space<vmem>>, vector<4x24xf32>
    %cst_50 = arith.constant dense<0.000000e+00> : vector<4x32xf32>
    %180 = tpu.matmul %179, %178, %cst_50 {dimension_numbers = #tpu.dot_dimension_numbers<[1], [0], [0], [1], [0, 0, 1, 1], [], []>} : vector<4x24xf32>, vector<24x32xf32>, vector<4x32xf32> -> vector<4x32xf32>
    %c0_51 = arith.constant 0 : index
    %c0_52 = arith.constant 0 : index
    %181 = vector.load %arg8[%c0_51, %c0_52] : memref<4x1xf32, #tpu.memory_space<vmem>>, vector<4x1xf32>
    %182 = vector.broadcast %181 : vector<4x1xf32> to vector<4x32xf32>
    %183 = arith.addf %180, %182 : vector<4x32xf32>
    %cst_53 = arith.constant 0.000000e+00 : f32
    %184 = vector.broadcast %cst_53 : f32 to vector<4x32xf32>
    %185 = arith.maximumf %183, %184 : vector<4x32xf32>
    %cst_54 = arith.constant 0.000000e+00 : f32
    %186 = vector.broadcast %cst_54 : f32 to vector<4x32xf32>
    %187 = arith.minimumf %183, %186 : vector<4x32xf32>
    %188 = vector.broadcast %164 : f32 to vector<4x32xf32>
    %189 = arith.mulf %188, %187 : vector<4x32xf32>
    %190 = arith.addf %185, %189 : vector<4x32xf32>
    %191 = vector.extract_strided_slice %190 {offsets = [0, 0], sizes = [4, 16], strides = [1, 1]} : vector<4x32xf32> to vector<4x16xf32>
    %c0_55 = arith.constant 0 : index
    %c0_56 = arith.constant 0 : index
    %c0_57 = arith.constant 0 : index
    %192 = vector.load %arg10[%c0_55, %c0_56, %c0_57] : memref<2x4x16xf32, #tpu.memory_space<vmem>>, vector<1x4x16xf32>
    %193 = vector.shape_cast %192 : vector<1x4x16xf32> to vector<4x16xf32>
    %194 = vector.shape_cast %191 : vector<4x16xf32> to vector<1x4x16xf32>
    tpu.vector_store %arg10[%c0_55, %c0_56, %c0_57], %194 {strides = array<i32>} : memref<2x4x16xf32, #tpu.memory_space<vmem>>, vector<1x4x16xf32>,
    %195 = vector.extract_strided_slice %190 {offsets = [0, 16], sizes = [4, 16], strides = [1, 1]} : vector<4x32xf32> to vector<4x16xf32>
    %c1_58 = arith.constant 1 : index
    %c0_59 = arith.constant 0 : index
    %c0_60 = arith.constant 0 : index
    %196 = vector.load %arg10[%c1_58, %c0_59, %c0_60] : memref<2x4x16xf32, #tpu.memory_space<vmem>>, vector<1x4x16xf32>
    %197 = vector.shape_cast %196 : vector<1x4x16xf32> to vector<4x16xf32>
    %198 = vector.shape_cast %195 : vector<4x16xf32> to vector<1x4x16xf32>
    tpu.vector_store %arg10[%c1_58, %c0_59, %c0_60], %198 {strides = array<i32>} : memref<2x4x16xf32, #tpu.memory_space<vmem>>, vector<1x4x16xf32>,
    return
  }
}

</mosaic_0001>

<bundles_post_ra>
// kernel: cnn_encoder_decoder_forward.1
= control target key start
LH: loop header
LB: loop body
LE: loop exit
PB: predicated region body
PF: predicated region fallthrough
CT: control target
= control target key end

     0   :  { %15 = vsyncpa [#allocation4], 0  ;;  %s1063_s0 = inlined_call_operand.vmem [shape: f32[2,4,16], index: 0, kind: input, shape index: {}]   ;;  %s1064_s1 = inlined_call_operand.vmem [shape: f32[8,12], index: 1, kind: input, shape index: {}]   ;;  %s1065_s2 = inlined_call_operand.vmem [shape: f32[8,1], index: 2, kind: input, shape index: {}]   ;;  %s1066_s3 = inlined_call_operand.vmem [shape: f32[6,40], index: 3, kind: input, shape index: {}]   ;;  %s1067_s4 = inlined_call_operand.vmem [shape: f32[6,1], index: 4, kind: input, shape index: {}]   ;;  %s1068_s5 = inlined_call_operand.vmem [shape: f32[8,30], index: 5, kind: input, shape index: {}]   ;;  %s1069_s6 = inlined_call_operand.vmem [shape: f32[8,1], index: 6, kind: input, shape index: {}]   ;;  %s1070_s7 = inlined_call_operand.vmem [shape: f32[4,24], index: 7, kind: input, shape index: {}]   ;;  %s1071_s8 = inlined_call_operand.vmem [shape: f32[4,1], index: 8, kind: input, shape index: {}]   ;;  %s1072_s9 = inlined_call_operand.vmem [shape: f32[2], index: 9, kind: input, shape index: {}]   ;;  %s1073_s10 = inlined_call_operand.hbm [shape: f32[2,4,16], index: 10, kind: output, shape index: {}]  }
   0x1   :  { %16 = vsyncpa [#allocation3], 0  ;;  %s40_s15 = sshll.u32 %s1072_s9, 4  ;;  %s799_s16 = smov [#allocation2]   ;;  %s41_s15 = int_to_ptr.vmem [resolvable:$true] %s40_s15 }
   0x2   :  { %43 = dma.vmem_to_smem %s41_s15, 16, %s799_s16, [#allocation4]  }
   0x3   :  { %795 = dma.done.wait [#allocation4], 16  }
   0x4   :  { %796 = vsyncadd [#allocation4], 4294967280 }
   0x5   :  { %48 = sfence }
   0x6   :  { %v671_v0 = vld [vmem:[%s1063_s0 + $0x4] sm:$0xf]  ;;  %s800_s19 = smov 16   ;;  %v49_v1 = vld [vmem:[%s1063_s0] sm:$0xf]  ;;  %vm56_vm0 = vcmask 130048   ;;  %v133_v16 = vlaneseq }
   0x7   :  { %53 = vrot.lane.b32.xlu0 %v671_v0, %s800_s19  ;;  %s801_s9 = smov 1   ;;  %s802_s22 = smov 113   ;;  %vm62_vm1 = vcmask 7168   ;;  %vm64_vm2 = vcmask 138240   ;;  %vm74_vm3 = vcmask 1043456   ;;  %v99_v15 = vld [vmem:[%s1065_s2] sm:$0xff] }
   0x8   :  { %s803_s0 = smov 126   ;;  %s804_s23 = smov 127   ;;  %v805_v17 = vmov 0   ;;  %v899_v18 = vshrl.u32 %v133_v16, 7  ;;  %v901_v19 = vand.u32 127, %v133_v16  ;;  %v806_v24 = vmov 1.0  }
   0x9   :  { %737 = vset.pattern.permute.xlu0 %v805_v17  ;;  %753 = vset.pattern.permute.xlu2 %v805_v17  ;;  %v98_v31 = vld [vmem:[%s1064_s1] sm:$0xff]  ;;  %vm105_vm8 = vcmask 97280   ;;  %vm166_vm13 = vcmask 261120   ;;  %s807_s1 = smov 2   ;;  %s808_s27 = smov 122   ;;  %vm218_vm14 = vcmask 15360  }
   0xa   :  { %v137_v20 = vadd.s32 24, %v899_v18  ;;  %v140_v21 = vmul.u32 2, %v901_v19  ;;  %v136_v22 = vadd.s32 16, %v899_v18  ;;  %v918_v33 = vadd.s32 8, %v899_v18  ;;  %s809_s28 = smov 125   ;;  %s810_s29 = smov 124  }
   0xb   :  { %vm220_vm15 = vcmask 80896   ;;  %s811_s30 = smov 8   ;;  %v271_v53 = vld [vmem:[%s1067_s4] sm:$0x3f]  ;;  %v812_v17 = vmov 0.0   ;;  %s814_s21 = smov [#allocation5]  }
   0xc   :  { %vm144_vm4 = vcmp.eq.s32.totalorder %v137_v20, %v140_v21  ;;  %v153_v23 = vadd.s32 1, %v140_v21  ;;  %vm143_vm5 = vcmp.eq.s32.totalorder %v136_v22, %v140_v21  ;;  %vm142_vm9 = vcmp.eq.s32.totalorder %v918_v33, %v140_v21  ;;  %s816_s24 = smov 4  }
   0xd   :  { %682 = vmatpush.msk.msra.mxu1 %vm144_vm4, %v806_v24  ;;  %vm141_vm11 = vcmp.eq.s32.totalorder %v899_v18, %v140_v21  ;;  %vm264_vm4 = vcmask 64512  }
   0xe   :  { %vm157_vm6 = vcmp.eq.s32.totalorder %v137_v20, %v153_v23  ;;  %vm156_vm7 = vcmp.eq.s32.totalorder %v136_v22, %v153_v23  ;;  %vm155_vm10 = vcmp.eq.s32.totalorder %v918_v33, %v153_v23  ;;  %vm154_vm12 = vcmp.eq.s32.totalorder %v899_v18, %v153_v23 }
   0xf   :  { %687 = vmatpush.msk.msra.mxu2 %vm157_vm6, %v806_v24  ;;  %683 = vmatpush.msk.msra.mxu1 %vm143_vm5, %v806_v24  ;;  %vm277_vm5 = vcmask 326656  }
  0x11   :  { %688 = vmatpush.msk.msra.mxu2 %vm156_vm7, %v806_v24  ;;  %684 = vmatpush.msk.msra.mxu1 %vm142_vm9, %v806_v24 }
  0x13   :  { %689 = vmatpush.msk.msra.mxu2 %vm155_vm10, %v806_v24  ;;  %685 = vmatpush.msk.msra.mxu1 %vm141_vm11, %v806_v24 }
  0x15   :  { %690 = vmatpush.msk.msra.mxu2 %vm154_vm12, %v806_v24  ;;  %697 = vmatpush.msk.msrb.mxu1 %vm155_vm10, %v806_v24  ;;  %vm429_vm10 = vcmask 1045504  }
  0x17   :  { %698 = vmatpush.msk.msrb.mxu1 %vm154_vm12, %v806_v24 }
  0x79   :  { %v54_v2 = vpop.permute.xlu0 %53 }
  0x7a   :  { %v57_v3 = vsel %vm56_vm0, %v49_v1, %v54_v2 }
  0x7b   :  { %59 = vrot.lane.b32.xlu1 %v57_v3, %s801_s9  ;;  %76 = vrot.lane.b32.xlu0 %v57_v3, %s802_s22 }
  0xed   :  { %v60_v4 = vpop.permute.xlu1 %59  ;;  %v77_v5 = vpop.permute.xlu0 %76 }
  0xee   :  { %v79_v6 = vsel %vm62_vm1, 0.0, %v77_v5  ;;  %v63_v8 = vsel %vm62_vm1, 0.0, %v60_v4  ;;  %v270_v5 = vld [vmem:[%s1066_s3] sm:$0x3f] }
  0xef   :  { %v80_v7 = vsel %vm64_vm2, %v79_v6, 0.0  ;;  %v65_v10 = vsel %vm64_vm2, %v63_v8, 0.0 }
  0xf0   :  { %86 = vrot.lane.b32.xlu1 %v80_v7, %s803_s0  ;;  %v82_v9 = vrot.slane %v80_v7, 4  ;;  %v67_v11 = vrot.slane %v65_v10, 4 }
  0xf2   :  { %83 = vrot.lane.b32.xlu2 %v82_v9, %s804_s23 }
  0xf8   :  { %68 = vrot.lane.b32.xlu1 %v67_v11, %s804_s23  ;;  %v349_v11 = vmul.u32 2, %v899_v18 }
  0xfa   :  { %71 = vrot.lane.b32.xlu2 %v65_v10, %s803_s0  ;;  %vm972_vm6 = vcmp.eq.s32.totalorder %v901_v19, %v349_v11 }
 0x14c   :  { %v84_v12 = vpop.permute.xlu2 %83 }
 0x14d   :  { %v88_v13 = vsel %vm74_vm3, %v80_v7, %v84_v12  ;;  %v969_v12 = vadd.s32 1, %v349_v11 }
 0x14e   :  { %90 = vrot.lane.b32.xlu2 %v88_v13, %s800_s19 }
 0x14f   :  { %vm354_vm7 = vcmp.eq.s32.totalorder %v901_v19, %v969_v12 }
 0x150   :  { %703 = vmatpush.msk.msrb.mxu2 %vm354_vm7, %v806_v24 }
 0x154   :  { %v72_v25 = vpop.permute.xlu2 %71 }
 0x162   :  { %v87_v14 = vpop.permute.xlu1 %86 }
 0x163   :  { %92 = vrot.lane.b32.xlu0 %v87_v14, %s800_s19 }
 0x16a   :  { %v69_v26 = vpop.permute.xlu1 %68 }
 0x16b   :  { %102 = vperm.xlu0 %737, %v99_v15   ;;  %v75_v30 = vsel %vm74_vm3, %v65_v10, %v69_v26 }
 0x1a8   :  { %v91_v27 = vpop.permute.xlu2 %90 }
 0x1a9   :  { %v96_v32 = vsel %vm56_vm0, %v75_v30, %v91_v27 }
 0x1d5   :  { %v93_v28 = vpop.permute.xlu0 %92 }
 0x1d6   :  { %v97_v29 = vsel %vm56_vm0, %v72_v25, %v93_v28 }
 0x1d7   :  { %672 = vmatpush.msk.msra.mxu0 %vm74_vm3, %v97_v29 }
 0x1d9   :  { %127 = vmatpush.msra.mxu0 %v96_v32 }
 0x1da   :  { %673 = vmatmul.msk.f32.vlgmr.msra.gmra.mxu0 %vm105_vm8, %v98_v31 }
 0x1db   :  { %694 = vmatpush.msk.msrb.mxu0 %vm142_vm9, %v806_v24  ;;  %vm432_vm9 = vcmask 1041408  }
 0x1dd   :  { %695 = vmatpush.msk.msrb.mxu0 %vm141_vm11, %v806_v24  ;;  %v103_v34 = vpop.permute.xlu0 %102  ;;  %vm483_vm11 = vcmask 244736  }
 0x257   :  { %v129_v35 = vpop.f32.mrf.mxu0 }
 0x258   :  { %v130_v36 = vadd.f32 %v129_v35, %v103_v34 }
 0x25a   :  { %v132_v37 = vmax.f32 %v130_v36, 0.0 }
 0x25c   :  { %686 = vmatmul.msk.f32.vlgmr.msra.gmra.mxu1 %vm166_vm13, %v132_v37  ;;  %691 = vmatmul.msk.f32.vlgmr.msra.gmra.mxu2 %vm166_vm13, %v132_v37 }
 0x2d9   :  { %v932_v38 = vpop.f32.mrf.mxu1 }
 0x2df   :  { %v934_v39 = vpop.f32.mrf.mxu2 }
 0x2e0   :  { %v210_v40 = vmax.f32 %v932_v38, %v934_v39  ;;  %vm211_vm13 = vcmp.ge.f32.partialorder %v932_v38, %v934_v39 }
 0x2e2   :  { %215 = vrot.lane.b32.xlu2 %v210_v40, %s807_s1  ;;  %235 = vrot.lane.b32.xlu1 %v210_v40, %s808_s27 }
 0x33c   :  { %v216_v44 = vpop.permute.xlu2 %215 }
 0x33d   :  { %v219_v45 = vsel %vm218_vm14, 0.0, %v216_v44 }
 0x33e   :  { %v221_v46 = vsel %vm220_vm15, %v219_v45, 0.0 }
 0x354   :  { %v236_v41 = vpop.permute.xlu1 %235 }
 0x355   :  { %v238_v42 = vsel %vm218_vm14, 0.0, %v236_v41 }
 0x356   :  { %v239_v43 = vsel %vm220_vm15, %v238_v42, 0.0 }
 0x357   :  { %243 = vrot.lane.b32.xlu0 %v239_v43, %s803_s0  ;;  %245 = vrot.lane.b32.xlu2 %v239_v43, %s809_s28 }
 0x358   :  { %247 = vrot.lane.b32.xlu1 %v239_v43, %s810_s29 }
 0x35f   :  { %232 = vrot.lane.b32.xlu2 %v221_v46, %s810_s29 }
 0x360   :  { %241 = vrot.lane.b32.xlu1 %v239_v43, %s804_s23 }
 0x367   :  { %226 = vrot.lane.b32.xlu2 %v221_v46, %s803_s0 }
 0x368   :  { %229 = vrot.lane.b32.xlu1 %v221_v46, %s809_s28 }
 0x36f   :  { %249 = vrot.lane.b32.xlu2 %v239_v43, %s811_s30 }
 0x370   :  { %223 = vrot.lane.b32.xlu1 %v221_v46, %s804_s23 }
 0x3b1   :  { %v246_v47 = vpop.permute.xlu2 %245 }
 0x3b9   :  { %v233_v54 = vpop.permute.xlu2 %232 }
 0x3c1   :  { %v227_v58 = vpop.permute.xlu2 %226 }
 0x3c9   :  { %v244_v50 = vpop.permute.xlu0 %243  ;;  %v250_v2 = vpop.permute.xlu2 %249 }
 0x3ca   :  { %v248_v48 = vpop.permute.xlu1 %247  ;;  %v265_v6 = vsel %vm264_vm4, %v221_v46, %v250_v2  ;;  %v476_v2 = vld [vmem:[%s1068_s5] sm:$0xff]  ;;  %s406_s5 = sld [smem:[#allocation2]] }
 0x3cb   :  { %v738_v49 = vpack.i.bf16 %v246_v47, %v248_v48 }
 0x3cd   :  { %739 = vrot.lane.b32.xlu0 %v738_v49, %s811_s30 }
 0x3d2   :  { %v242_v51 = vpop.permute.xlu1 %241 }
 0x3d3   :  { %v743_v52 = vpack.i.bf16 %v242_v51, %v244_v50 }
 0x3d5   :  { %744 = vrot.lane.b32.xlu0 %v743_v52, %s811_s30 }
 0x3da   :  { %v230_v59 = vpop.permute.xlu1 %229 }
 0x3dd   :  { %274 = vperm.xlu0 %737, %v271_v53  }
 0x3e2   :  { %v224_v3 = vpop.permute.xlu1 %223 }
 0x43f   :  { %v740_v55 = vpop.permute.xlu0 %739 }
 0x440   :  { %v742_v56 = vunpack.i.h.bf16 %v740_v55  ;;  %v741_v57 = vunpack.i.l.bf16 %v740_v55 }
 0x442   :  { %v269_v60 = vsel %vm264_vm4, %v233_v54, %v741_v57  ;;  %v268_v61 = vsel %vm264_vm4, %v230_v59, %v742_v56  ;;  %v477_v54 = vld [vmem:[%s1069_s6] sm:$0xff] }
 0x443   :  { %292 = vmatpush.msra.mxu3 %v269_v60 }
 0x445   :  { %293 = vmatpush.msra.mxu3 %v268_v61 }
 0x447   :  { %v745_v62 = vpop.permute.xlu0 %744 }
 0x448   :  { %v747_v63 = vunpack.i.h.bf16 %v745_v62  ;;  %v746_v0 = vunpack.i.l.bf16 %v745_v62 }
 0x44a   :  { %v267_v1 = vsel %vm264_vm4, %v227_v58, %v746_v0  ;;  %v266_v4 = vsel %vm264_vm4, %v224_v3, %v747_v63 }
 0x44b   :  { %294 = vmatpush.msra.mxu3 %v267_v1 }
 0x44d   :  { %295 = vmatpush.msra.mxu3 %v266_v4  ;;  %v515_v4 = vmul.u32 2, %v918_v33 }
 0x44f   :  { %296 = vmatpush.msra.mxu3 %v265_v6  ;;  %v275_v7 = vpop.permute.xlu0 %274 }
 0x450   :  { %693 = vmatmul.msk.f32.vlgmr.msra.gmra.mxu3 %vm277_vm5, %v270_v5  ;;  %v519_v5 = vadd.s32 1, %v515_v4 }
 0x451   :  { %705 = vmatpush.msk.msrb.mxu3 %vm972_vm6, %v806_v24 }
 0x452   :  { %vm520_vm12 = vcmp.eq.s32.totalorder %v901_v19, %v519_v5 }
 0x453   :  { %711 = vmatpush.msk.msra.mxu1 %vm520_vm12, %v806_v24 }
 0x455   :  { %712 = vmatpush.msk.msra.mxu1 %vm354_vm7, %v806_v24 }
 0x4d3   :  { %v298_v8 = vpop.f32.mrf.mxu3 }
 0x4d4   :  { %v299_v9 = vadd.f32 %v298_v8, %v275_v7  ;;  %v512_v8 = vstv %s406_s5 }
 0x4d6   :  { %v301_v10 = vmax.f32 %v299_v9, 0.0 }
 0x4d8   :  { %696 = vmatmul.msk.f32.vlgmr.msrb.gmra.mxu0 %vm56_vm0, %v301_v10  ;;  %699 = vmatmul.msk.f32.vlgmr.msrb.gmra.mxu1 %vm56_vm0, %v301_v10  ;;  %v692_v10 = vsel %vm211_vm13, 1.0, %v812_v17 }
 0x555   :  { %v322_v14 = vpop.f32.mrf.mxu0  ;;  %v342_v15 = vpop.f32.mrf.mxu1 }
 0x556   :  { %v345_v16 = vmax.f32 %v322_v14, %v342_v15  ;;  %vm346_vm8 = vcmp.ge.f32.partialorder %v322_v14, %v342_v15  ;;  %v524_v15 = vsub.f32 1.0, %v692_v10 }
 0x557   :  { %v700_v18 = vsel %vm346_vm8, 1.0, %v812_v17 }
 0x558   :  { %v357_v20 = vmul.f32 %v700_v18, %v345_v16  ;;  %v358_v21 = vsub.f32 1.0, %v700_v18 }
 0x55a   :  { %v359_v22 = vmul.f32 %v358_v21, %v345_v16  ;;  %706 = vmatmul.msk.f32.vlgmr.msrb.gmra.mxu3 %vm264_vm4, %v357_v20 }
 0x55c   :  { %704 = vmatmul.msk.f32.vlgmr.msrb.gmra.mxu2 %vm264_vm4, %v359_v22 }
 0x5dd   :  { %v403_v23 = vpop.f32.mrf.mxu3 }
 0x5df   :  { %v380_v25 = vpop.f32.mrf.mxu2 }
 0x5e0   :  { %v404_v26 = vadd.f32 %v403_v23, %v380_v25 }
 0x5e2   :  { %408 = vrot.lane.b32.xlu2 %v404_v26, %s807_s1  ;;  %434 = vrot.lane.b32.xlu1 %v404_v26, %s808_s27 }
 0x63c   :  { %v409_v32 = vpop.permute.xlu2 %408 }
 0x63d   :  { %v411_v34 = vsel %vm218_vm14, 0.0, %v409_v32 }
 0x63e   :  { %v412_v36 = vsel %vm220_vm15, %v411_v34, 0.0 }
 0x63f   :  { %v418_v37 = vrot.slane %v412_v36, 4  ;;  %v422_v40 = vrot.slane %v412_v36, 6  ;;  %v414_v41 = vrot.slane %v412_v36, 2 }
 0x654   :  { %v435_v27 = vpop.permute.xlu1 %434 }
 0x655   :  { %v437_v28 = vsel %vm218_vm14, 0.0, %v435_v27  ;;  %v609_v27 = vld [vmem:[%s1071_s8] sm:$0xf]  ;;  %s717_s8 = sld [smem:[#allocation2 + $0x1]] }
 0x656   :  { %v438_v29 = vsel %vm220_vm15, %v437_v28, 0.0 }
 0x657   :  { %452 = vrot.lane.b32.xlu0 %v438_v29, %s810_s29  ;;  %v448_v30 = vrot.slane %v438_v29, 6  ;;  %v444_v31 = vrot.slane %v438_v29, 4  ;;  %v440_v35 = vrot.slane %v438_v29, 2 }
 0x659   :  { %449 = vrot.lane.b32.xlu2 %v448_v30, %s809_s28  ;;  %445 = vrot.lane.b32.xlu1 %v444_v31, %s803_s0 }
 0x65f   :  { %441 = vrot.lane.b32.xlu0 %v440_v35, %s804_s23 }
 0x661   :  { %426 = vrot.lane.b32.xlu1 %v412_v36, %s810_s29 }
 0x667   :  { %419 = vrot.lane.b32.xlu0 %v418_v37, %s803_s0  ;;  %v608_v37 = vld [vmem:[%s1070_s7] sm:$0xf]  ;;  %s656_s7 = sshll.u32 %s814_s21, 4  ;;  %s657_s7 = int_to_ptr.vmem [resolvable:$true] %s656_s7 }
 0x669   :  { %423 = vrot.lane.b32.xlu1 %v422_v40, %s809_s28 }
 0x66f   :  { %415 = vrot.lane.b32.xlu0 %v414_v41, %s804_s23 }
 0x6b3   :  { %v450_v44 = vpop.permute.xlu2 %449 }
 0x6c9   :  { %v453_v42 = vpop.permute.xlu0 %452 }
 0x6ca   :  { %466 = vrot.lane.b32.xlu2 %v453_v42, %s811_s30 }
 0x6cb   :  { %v446_v43 = vpop.permute.xlu1 %445 }
 0x6cc   :  { %v456_v46 = vsel %vm432_vm9, %v446_v43, %v450_v44  ;;  %v641_v44 = vstv %s717_s8 }
 0x6d1   :  { %v442_v45 = vpop.permute.xlu0 %441 }
 0x6d2   :  { %v455_v47 = vsel %vm74_vm3, %v442_v45, %v446_v43  ;;  %v454_v48 = vsel %vm429_vm10, %v438_v29, %v442_v45 }
 0x6d3   :  { %v748_v49 = vpack.i.bf16 %v455_v47, %v456_v46  ;;  %460 = vrot.lane.b32.xlu1 %v454_v48, %s811_s30  ;;  %v427_v50 = vpop.permute.xlu1 %426 }
 0x6d5   :  { %749 = vrot.lane.b32.xlu2 %v748_v49, %s811_s30 }
 0x6d9   :  { %v420_v53 = vpop.permute.xlu0 %419 }
 0x6db   :  { %v424_v55 = vpop.permute.xlu1 %423 }
 0x6dc   :  { %v433_v60 = vsel %vm432_vm9, %v420_v53, %v424_v55 }
 0x6dd   :  { %480 = vperm.xlu2 %753, %v477_v54  }
 0x6e1   :  { %v416_v57 = vpop.permute.xlu0 %415 }
 0x6e2   :  { %v431_v62 = vsel %vm74_vm3, %v416_v57, %v420_v53  ;;  %v430_v0 = vsel %vm429_vm10, %v412_v36, %v416_v57  ;;  %vm516_vm3 = vcmp.eq.s32.totalorder %v901_v19, %v515_v4 }
 0x6e3   :  { %714 = vmatpush.msk.msra.mxu2 %vm516_vm3, %v806_v24 }
 0x6e5   :  { %715 = vmatpush.msk.msra.mxu2 %vm972_vm6, %v806_v24 }
 0x724   :  { %v467_v51 = vpop.permute.xlu2 %466 }
 0x725   :  { %v475_v52 = vsel %vm264_vm4, %v427_v50, %v467_v51 }
 0x726   :  { %707 = vmatpush.msk.msra.mxu0 %vm429_vm10, %v475_v52 }
 0x72f   :  { %v750_v56 = vpop.permute.xlu2 %749 }
 0x730   :  { %v752_v58 = vunpack.i.h.bf16 %v750_v56  ;;  %v751_v59 = vunpack.i.l.bf16 %v750_v56 }
 0x732   :  { %v474_v61 = vsel %vm264_vm4, %v433_v60, %v751_v59  ;;  %v473_v63 = vsel %vm264_vm4, %v431_v62, %v752_v58 }
 0x733   :  { %503 = vmatpush.msra.mxu0 %v474_v61 }
 0x735   :  { %504 = vmatpush.msra.mxu0 %v473_v63 }
 0x737   :  { %v481_v33 = vpop.permute.xlu2 %480 }
 0x745   :  { %v461_v1 = vpop.permute.xlu1 %460 }
 0x746   :  { %v472_v3 = vsel %vm264_vm4, %v430_v0, %v461_v1 }
 0x747   :  { %505 = vmatpush.msra.mxu0 %v472_v3 }
 0x748   :  { %708 = vmatmul.msk.f32.vlgmr.msra.gmra.mxu0 %vm483_vm11, %v476_v2 }
 0x7c5   :  { %v507_v6 = vpop.f32.mrf.mxu0 }
 0x7c6   :  { %v508_v7 = vadd.f32 %v507_v6, %v481_v33 }
 0x7c8   :  { %v511_v9 = vmin.f32 %v508_v7, 0.0  ;;  %v510_v11 = vmax.f32 %v508_v7, 0.0 }
 0x7ca   :  { %v513_v14 = vmul.f32 %v512_v8, %v511_v9 }
 0x7cc   :  { %v514_v19 = vadd.f32 %v513_v14, %v510_v11 }
 0x7ce   :  { %v523_v12 = vmul.f32 %v692_v10, %v514_v19  ;;  %v525_v16 = vmul.f32 %v524_v15, %v514_v19 }
 0x7d0   :  { %713 = vmatmul.msk.f32.vlgmr.msra.gmra.mxu1 %vm56_vm0, %v525_v16  ;;  %716 = vmatmul.msk.f32.vlgmr.msra.gmra.mxu2 %vm56_vm0, %v523_v12 }
 0x84d   :  { %v546_v24 = vpop.f32.mrf.mxu1 }
 0x853   :  { %v569_v13 = vpop.f32.mrf.mxu2 }
 0x854   :  { %v570_v18 = vadd.f32 %v569_v13, %v546_v24 }
 0x856   :  { %574 = vrot.lane.b32.xlu1 %v570_v18, %s801_s9  ;;  %586 = vrot.lane.b32.xlu0 %v570_v18, %s802_s22 }
 0x8c8   :  { %v575_v38 = vpop.permute.xlu1 %574  ;;  %v587_v39 = vpop.permute.xlu0 %586 }
 0x8c9   :  { %v577_v17 = vsel %vm62_vm1, 0.0, %v575_v38  ;;  %v589_v20 = vsel %vm62_vm1, 0.0, %v587_v39  ;;  %vm615_vm1 = vcmask 195584  }
 0x8ca   :  { %v578_v21 = vsel %vm64_vm2, %v577_v17, 0.0  ;;  %v590_v22 = vsel %vm64_vm2, %v589_v20, 0.0  ;;  %vm644_vm2 = vcmask 125952  }
 0x8cb   :  { %583 = vrot.lane.b32.xlu1 %v578_v21, %s803_s0  ;;  %592 = vrot.lane.b32.xlu0 %v590_v22, %s804_s23 }
 0x8cc   :  { %594 = vrot.lane.b32.xlu2 %v590_v22, %s803_s0  ;;  %s658_s0 = sshll.u32 %s1073_s10, 4  ;;  %s659_s0 = int_to_ptr.hbm [resolvable:$true] %s658_s0 }
 0x8d3   :  { %596 = vrot.lane.b32.xlu1 %v590_v22, %s800_s19  ;;  %580 = vrot.lane.b32.xlu0 %v578_v21, %s804_s23  ;;  %s815_s23 = smov 64  }
 0x926   :  { %v595_v23 = vpop.permute.xlu2 %594 }
 0x93d   :  { %v593_v25 = vpop.permute.xlu0 %592  ;;  %v584_v28 = vpop.permute.xlu1 %583 }
 0x93e   :  { %v754_v26 = vpack.i.bf16 %v593_v25, %v595_v23 }
 0x940   :  { %755 = vrot.lane.b32.xlu2 %v754_v26, %s800_s19  ;;  %s813_s19 = smov 112  }
 0x945   :  { %v597_v34 = vpop.permute.xlu1 %596  ;;  %v581_v35 = vpop.permute.xlu0 %580 }
 0x946   :  { %v605_v40 = vsel %vm56_vm0, %v578_v21, %v597_v34 }
 0x948   :  { %612 = vperm.xlu2 %753, %v609_v27  }
 0x99a   :  { %v756_v29 = vpop.permute.xlu2 %755 }
 0x99b   :  { %v758_v30 = vunpack.i.h.bf16 %v756_v29  ;;  %v757_v31 = vunpack.i.l.bf16 %v756_v29 }
 0x99d   :  { %v607_v32 = vsel %vm56_vm0, %v584_v28, %v757_v31  ;;  %v606_v36 = vsel %vm56_vm0, %v581_v35, %v758_v30 }
 0x99e   :  { %632 = vmatpush.msra.mxu3 %v607_v32 }
 0x9a0   :  { %633 = vmatpush.msra.mxu3 %v606_v36 }
 0x9a2   :  { %634 = vmatpush.msra.mxu3 %v605_v40  ;;  %v613_v41 = vpop.permute.xlu2 %612 }
 0x9a3   :  { %718 = vmatmul.msk.f32.vlgmr.msra.gmra.mxu3 %vm615_vm1, %v608_v37 }
 0xa26   :  { %v636_v42 = vpop.f32.mrf.mxu3 }
 0xa27   :  { %v637_v43 = vadd.f32 %v636_v42, %v613_v41 }
 0xa29   :  { %v640_v45 = vmin.f32 %v637_v43, 0.0  ;;  %v639_v46 = vmax.f32 %v637_v43, 0.0 }
 0xa2b   :  { %v642_v47 = vmul.f32 %v641_v44, %v640_v45 }
 0xa2d   :  { %v643_v48 = vadd.f32 %v642_v47, %v639_v46 }
 0xa2f   :  { %647 = vrot.lane.b32.xlu0 %v643_v48, %s813_s19  ;;  %645 = vst.msk [vmem:[#allocation5] sm:$0xf] %vm644_vm2, %v643_v48 }
 0xaa1   :  { %v648_v49 = vpop.permute.xlu0 %647 }
 0xaa2   :  { %651 = vst.msk [vmem:[#allocation5 + $0x4] sm:$0xf] %vm644_vm2, %v648_v49 }
 0xaa3   :  { %664 = dma.vmem_to_hbm [thread:$0]  %s657_s7, 128, %s659_s0, [#allocation3], %s815_s23, %s815_s23, %s816_s24  }
 0xaa4   :  { %797 = dma.done.wait [#allocation3], 128  }
 0xaa5   :  { %798 = vsyncadd [#allocation3], 4294967168 }
 0xaa6   :  { %669 = vsyncpa [#allocation3], 1 }
 0xaa7   :  { %670 = vsyncpa [#allocation4], 1 }

</bundles_post_ra>
